<compile_context>
chip_gen: v5e
topology: v5e:2x2
jax: 0.10.0
libtpu: 0.0.40
codegen_flags: <defaults>
</compile_context>

<pallas_src>
import functools

import jax
import jax.numpy as jnp
from jax import lax
from jax.experimental import pallas as pl
from jax.experimental.pallas import tpu as pltpu


def _esm_pooler_kernel(x_ref, w_ref, b_ref, out_ref):
    # x_ref  : (B_pad, H_in)  first-token activations (resident: same block every step)
    # w_ref  : (TN, H_in)     row-tile of the PyTorch-layout weight (out, in)
    # b_ref  : (1, TN)        bias tile (f32)
    # out_ref: (B_pad, TN)
    #
    # Contract x's H_in axis against w's H_in axis -> (B_pad, TN), MXU, f32 acc.
    # RHS is in PyTorch (N, K) layout; contracting its last dim avoids any
    # host-side weight transpose (same pattern as q @ k.T in flash attention).
    y = lax.dot_general(
        x_ref[...], w_ref[...],
        dimension_numbers=(((1,), (1,)), ((), ())),
        preferred_element_type=jnp.float32,
    )
    y = y + b_ref[...]                                   # bias add in f32
    out_ref[...] = jnp.tanh(y).astype(out_ref.dtype)     # tanh in f32, cast last


# Budget for the double-buffered weight tile (2 * TN * H * itemsize).  Kept
# under v5e's 16 MiB scoped-VMEM default; tiny vs v6e's 128 MiB / v7x's 64 MiB.
_WEIGHT_TILE_VMEM_BUDGET = 12 << 20


def _pick_col_tile(h: int, w_itemsize: int, max_tile: int = 1024) -> int:
    """Column-tile width TN.

    Largest multiple-of-128 divisor of h such that:
      * TN <= max_tile (amortizes the ~0.35 us per-grid-step overhead),
      * the double-buffered (TN, h) weight tile fits _WEIGHT_TILE_VMEM_BUDGET,
      * h // TN >= 2 when possible (so the "parallel" column axis can split
        across v7x's two TensorCores).
    Falls back to the full width for small / non-128-multiple h (full-dim
    blocks are always legal).
    """
    if h % 128 != 0:
        return h
    cap = min(max_tile, h // 2) if h >= 256 else h
    cap = max(128, (cap // 128) * 128)
    for tn in range(cap, 127, -128):
        if h % tn == 0 and 2 * tn * h * w_itemsize <= _WEIGHT_TILE_VMEM_BUDGET:
            return tn
    return 128


@functools.partial(jax.jit, static_argnames=("col_tile", "weight_dtype"))
def esm_pooler(hidden_states: jax.Array,
               weight: jax.Array,
               bias: jax.Array,
               *,
               col_tile: int | None = None,
               weight_dtype: str | None = "bfloat16") -> jax.Array:
    """EsmPooler forward.

    hidden_states: [B, S, H]
    weight:        [H_out, H_in] = [H, H]  (PyTorch nn.Linear layout, NOT transposed)
    bias:          [H]
    weight_dtype:  dtype the weight (and activations) are streamed in.  Default
                   bf16 (f32 accumulation) for ~2x fewer HBM bytes on this
                   memory-bound GEMV; pass None or "float32" for exact f32.
    returns:       [B, H] = tanh(hidden_states[:, 0] @ weight.T + bias)
    """
    B, S, H = hidden_states.shape
    assert weight.shape == (H, H), weight.shape
    assert bias.shape == (H,), bias.shape

    w = weight if weight_dtype is None else weight.astype(jnp.dtype(weight_dtype))
    w_itemsize = jnp.dtype(w.dtype).itemsize
    # TODO(synk): int8 weights (+ per-row scales) on v5e/v6e and fp8 on v7x would
    # cut weight bytes ~4x further; needs a quantized parameter cache, not done here.

    # First-token slice + activation cast (hoisted out of the kernel) + sublane
    # padding of B.  All are tiny (B*H) wrapper ops that XLA fuses; the streamed
    # H*H weight dominates bytes.
    # TODO(synk): optionally fold the first-token slice into the kernel via a
    # (B, 1, H) BlockSpec on the 3-D hidden_states to drop the extra XLA op.
    x = hidden_states[:, 0, :].astype(w.dtype)
    B_pad = ((B + 7) // 8) * 8                         # unmasked vst on the output tile
    if B_pad != B:
        x = jnp.pad(x, ((0, B_pad - B), (0, 0)))

    b2d = bias.astype(jnp.float32).reshape(1, H)

    if col_tile is None:
        TN = _pick_col_tile(H, w_itemsize)
    else:
        TN = col_tile
        assert H % TN == 0 and (TN % 128 == 0 or TN == H), (
            "col_tile must divide H and be a multiple of 128 (or the full width)")
    n_tiles = H // TN

    out_dtype = hidden_states.dtype
    out_itemsize = jnp.dtype(out_dtype).itemsize
    x_itemsize = jnp.dtype(x.dtype).itemsize

    # Scoped-VMEM need: double-buffered weight tile + resident x + bias/out tiles.
    vmem_need = (2 * TN * H * w_itemsize
                 + 2 * B_pad * H * x_itemsize
                 + 2 * TN * 4
                 + 2 * B_pad * TN * out_itemsize)
    vmem_limit = int(min(max(vmem_need + (2 << 20), 16 << 20), 48 << 20))

    cost = pl.CostEstimate(
        flops=2 * B * H * H,
        transcendentals=B * H,
        bytes_accessed=(w_itemsize * H * H + x_itemsize * B * H
                        + 4 * H + out_itemsize * B * H),
    )

    out = pl.pallas_call(
        _esm_pooler_kernel,
        out_shape=jax.ShapeDtypeStruct((B_pad, H), out_dtype),
        grid=(n_tiles,),
        in_specs=[
            # x: same block every step -> stays resident in VMEM, no re-DMA.
            pl.BlockSpec((B_pad, H), lambda j: (0, 0)),
            # weight: stream (TN, H_in) row-tiles; DMA of tile j+1 overlaps MXU on j.
            pl.BlockSpec((TN, H), lambda j: (j, 0)),
            # bias tile
            pl.BlockSpec((1, TN), lambda j: (0, j)),
        ],
        out_specs=pl.BlockSpec((B_pad, TN), lambda j: (0, j)),
        compiler_params=pltpu.CompilerParams(
            dimension_semantics=("parallel",),   # independent column tiles (v7x 2-TC)
            vmem_limit_bytes=vmem_limit,
        ),
        cost_estimate=cost,
    )(x, w, b2d)
    return out[:B]


def esm_pooler_ref(hidden_states, weight, bias):
    x = hidden_states[:, 0]
    return jnp.tanh(x @ weight.T + bias)


if __name__ == "__main__":
    B, S, H = 2, 8, 32
    key = jax.random.PRNGKey(0)
    k_hs, k_w, k_b = jax.random.split(key, 3)

    hidden_states = jax.random.normal(k_hs, (B, S, H), dtype=jnp.float32)
    # Deterministic synthetic parameters for nn.Linear(H, H) in PyTorch layout.
    weight = jax.random.normal(k_w, (H, H), dtype=jnp.float32) * 0.02
    bias = jax.random.normal(k_b, (H,), dtype=jnp.float32) * 0.02

    ref = esm_pooler_ref(hidden_states, weight, bias)

    # Default path: bf16-streamed weights (mem-bound op -> ~2x fewer HBM bytes).
    out_bf16 = jax.block_until_ready(esm_pooler(hidden_states, weight, bias))
    assert out_bf16.shape == (B, H)
    assert jnp.allclose(out_bf16, ref, atol=1e-2, rtol=1e-2), "bf16 path mismatch"

    # Exact f32 path.
    out_f32 = jax.block_until_ready(
        esm_pooler(hidden_states, weight, bias, weight_dtype="float32"))
    assert out_f32.shape == (B, H)
    assert jnp.allclose(out_f32, ref, atol=1e-5, rtol=1e-5), "f32 path mismatch"

    print("KERNEL_OK")
</pallas_src>

<mosaic_0001>
module attributes {stable_mosaic.version = 11 : i64} {
  func.func @_esm_pooler_kernel(%arg0: i32, %arg1: memref<8x32xbf16, #tpu.memory_space<vmem>>, %arg2: memref<32x32xbf16, #tpu.memory_space<vmem>>, %arg3: memref<1x32xf32, #tpu.memory_space<vmem>>, %arg4: memref<8x32xf32, #tpu.memory_space<vmem>>) attributes {dimension_semantics = [#tpu.dimension_semantics<parallel>], iteration_bounds = array<i64: 1>, scalar_prefetch = 0 : i64, scratch_operands = 0 : i64, tpu.core_type = #tpu.core_type<tc>, window_params = [{pipeline_mode = #tpu.pipeline_mode<synchronous>, transform_indices = @transform_0, window_bounds = array<i64: 8, 32>}, {transform_indices = @transform_1, window_bounds = array<i64: 32, 32>}, {transform_indices = @transform_2, window_bounds = array<i64: 1, 32>}, {transform_indices = @transform_3, window_bounds = array<i64: 8, 32>}]} {
    %c0 = arith.constant 0 : index
    %c0_0 = arith.constant 0 : index
    %0 = vector.load %arg1[%c0, %c0_0] : memref<8x32xbf16, #tpu.memory_space<vmem>>, vector<8x32xbf16>
    %c0_1 = arith.constant 0 : index
    %c0_2 = arith.constant 0 : index
    %1 = vector.load %arg2[%c0_1, %c0_2] : memref<32x32xbf16, #tpu.memory_space<vmem>>, vector<32x32xbf16>
    %cst = arith.constant dense<0.000000e+00> : vector<8x32xf32>
    %2 = tpu.matmul %0, %1, %cst {dimension_numbers = #tpu.dot_dimension_numbers<[1], [1], [0], [0], [0, 0, 1, 0], [], []>} : vector<8x32xbf16>, vector<32x32xbf16>, vector<8x32xf32> -> vector<8x32xf32>
    %c0_3 = arith.constant 0 : index
    %c0_4 = arith.constant 0 : index
    %3 = vector.load %arg3[%c0_3, %c0_4] : memref<1x32xf32, #tpu.memory_space<vmem>>, vector<1x32xf32>
    %4 = vector.broadcast %3 : vector<1x32xf32> to vector<8x32xf32>
    %5 = arith.addf %2, %4 : vector<8x32xf32>
    %6 = math.tanh %5 : vector<8x32xf32>
    %c0_5 = arith.constant 0 : index
    %c0_6 = arith.constant 0 : index
    %7 = vector.load %arg4[%c0_5, %c0_6] : memref<8x32xf32, #tpu.memory_space<vmem>>, vector<8x32xf32>
    tpu.vector_store %arg4[%c0_5, %c0_6], %6 {strides = array<i32>} : memref<8x32xf32, #tpu.memory_space<vmem>>, vector<8x32xf32>,
    return
  }
  func.func @transform_0(%arg0: i32) -> (i32, i32) {
    %c0_i32 = arith.constant 0 : i32
    %c0_i32_0 = arith.constant 0 : i32
    %c0_i32_1 = arith.constant 0 : i32
    return %c0_i32, %c0_i32_0 : i32, i32
  }
  func.func @transform_1(%arg0: i32) -> (i32, i32) {
    %c0_i32 = arith.constant 0 : i32
    %c0_i32_0 = arith.constant 0 : i32
    return %arg0, %c0_i32 : i32, i32
  }
  func.func @transform_2(%arg0: i32) -> (i32, i32) {
    %c0_i32 = arith.constant 0 : i32
    %c0_i32_0 = arith.constant 0 : i32
    return %c0_i32, %arg0 : i32, i32
  }
  func.func @transform_3(%arg0: i32) -> (i32, i32) {
    %c0_i32 = arith.constant 0 : i32
    %c0_i32_0 = arith.constant 0 : i32
    return %c0_i32, %arg0 : i32, i32
  }
}

</mosaic_0001>

<bundles_post_ra>
// kernel: esm_pooler.1
= control target key start
LH: loop header
LB: loop body
LE: loop exit
PB: predicated region body
PF: predicated region fallthrough
CT: control target
= control target key end

     0   :  { %vm34_vm0 = vcmask 261120   ;;  %s116_s1 = inlined_call_operand.vmem [shape: bf16[32,32], index: 1, kind: input, shape index: {}]   ;;  %s117_s2 = inlined_call_operand.vmem [shape: f32[1,32], index: 2, kind: input, shape index: {}]   ;;  %s118_s0 = inlined_call_operand.vmem [shape: bf16[8,32], index: 0, kind: input, shape index: {}]   ;;  %s119_s3 = inlined_call_operand.vmem [shape: f32[8,32], index: 3, kind: output, shape index: {}]  }
   0x1   :  { %v73_v0 = vld [vmem:[%s116_s1 + $0x8] sm:$0xff]  ;;  %v72_v2 = vld [vmem:[%s116_s1] sm:$0xff] }
   0x2   :  { %v42_v1 = vsel %vm34_vm0, %v73_v0, 0  ;;  %v39_v3 = vsel %vm34_vm0, %v72_v2, 0  ;;  %v15_v4 = vld [vmem:[%s118_s0] sm:$0xf] }
   0x3   :  { %50 = vmatpush.bf16.xpose.msra.mxu0 %v42_v1  ;;  %v74_v5 = vld [vmem:[%s117_s2] ss:$0 sm:$0xff] }
   0xb   :  { %51 = vmatpush.bf16.xpose.msra.mxu0 %v39_v3 }
  0x12   :  { %71 = vmatmul.msk.bf16.vlgmr.msra.gmra.mxu0 %vm34_vm0, %v15_v4 }
  0x8f   :  { %v53_v6 = vpop.f32.mrf.mxu0 }
  0x90   :  { %v54_v7 = vadd.f32 %v74_v5, %v53_v6 }
  0x92   :  { %75 = vtanh.f32 %v54_v7 }
  0x97   :  { %v55_v8 = vpop.f32.mrf.mxu0 }
  0x98   :  { %v76_v9 = vpop.eup %75 }
  0x99   :  { %58 = vst.msk [vmem:[%s119_s3] sm:$0xff] %vm34_vm0, %v76_v9 }

</bundles_post_ra>
